<compile_context>
chip_gen: v6e
topology: v6e:2x2x1
jax: 0.10.0
libtpu: 0.0.40
codegen_flags: <defaults>
</compile_context>

<pallas_src>
import jax
import jax.numpy as jnp
from jax.experimental import pallas as pl
from jax.experimental.pallas import tpu as pltpu


def _round_up(x, m):
    return (x + m - 1) // m * m


def projection_head_kernel(x_ref, w1_ref, b1_ref, w2_ref, b2_ref, o_ref, acc_ref):
    """Grid point = (batch tile i, fc1-contraction tile k).

    x_ref  : (TB, TK)      bf16
    w1_ref : (TK, D_pad)   bf16   (K-tiled, hidden dim resident)
    b1_ref : (1, D_pad)    f32
    w2_ref : (D_pad, O_pad) bf16  (fully resident)
    b2_ref : (1, O_pad)    f32
    o_ref  : (TB, O_pad)
    acc_ref: (TB, D_pad)   f32 fc1 accumulator (VMEM scratch)
    """
    k = pl.program_id(1)

    @pl.when(k == 0)
    def _():
        acc_ref[...] = jnp.zeros_like(acc_ref)

    # Partial fc1: (TB, TK) @ (TK, D_pad), f32 accumulation on the MXU.
    acc_ref[...] += jnp.dot(x_ref[...], w1_ref[...],
                            preferred_element_type=jnp.float32)

    @pl.when(k == pl.num_programs(1) - 1)
    def _():
        # bias + ReLU in f32 (VPU), then fc2 on the MXU with f32 accumulation.
        h = jnp.maximum(acc_ref[...] + b1_ref[...], 0.0)
        out = jnp.dot(h.astype(w2_ref.dtype), w2_ref[...],
                      preferred_element_type=jnp.float32)
        o_ref[...] = (out + b2_ref[...]).astype(o_ref.dtype)


def projection_head(x, w1, b1, w2, b2, *, compute_dtype=jnp.bfloat16,
                    block_b=256, max_block_k=512):
    """x: (B, D); w1: (D, D); b1: (D,); w2: (D, O); b2: (O,) -> (B, O)."""
    B, D = x.shape
    D2, O = w2.shape
    assert w1.shape == (D, D) and D2 == D

    out_dtype = x.dtype

    # ---- tiling / lane alignment -------------------------------------------
    TB = block_b if B >= block_b else _round_up(B, 8)     # sublane-aligned batch tile
    B_pad = _round_up(B, TB)

    D_lanes = _round_up(D, 128)                            # 128-lane aligned features
    TK = D_lanes if D_lanes <= max_block_k else max_block_k
    D_pad = _round_up(D_lanes, TK)
    O_pad = _round_up(O, 128)

    # ---- dtype casts + zero padding (zeros are semantically inert here) ----
    xp = x.astype(compute_dtype)
    w1p = w1.astype(compute_dtype)
    w2p = w2.astype(compute_dtype)
    b1p = b1.astype(jnp.float32).reshape(1, D)
    b2p = b2.astype(jnp.float32).reshape(1, O)

    if B_pad != B or D_pad != D:
        xp = jnp.pad(xp, ((0, B_pad - B), (0, D_pad - D)))
    if D_pad != D:
        w1p = jnp.pad(w1p, ((0, D_pad - D), (0, D_pad - D)))
        b1p = jnp.pad(b1p, ((0, 0), (0, D_pad - D)))
    if D_pad != D or O_pad != O:
        w2p = jnp.pad(w2p, ((0, D_pad - D), (0, O_pad - O)))
    if O_pad != O:
        b2p = jnp.pad(b2p, ((0, 0), (0, O_pad - O)))

    nb = B_pad // TB
    nk = D_pad // TK

    out = pl.pallas_call(
        projection_head_kernel,
        out_shape=jax.ShapeDtypeStruct((B_pad, O_pad), out_dtype),
        grid=(nb, nk),
        in_specs=[
            pl.BlockSpec((TB, TK), lambda i, k: (i, k)),        # x: batch+K tiled
            pl.BlockSpec((TK, D_pad), lambda i, k: (k, 0)),     # w1: K tiled, resident over batch
            pl.BlockSpec((1, D_pad), lambda i, k: (0, 0)),      # b1: resident
            pl.BlockSpec((D_pad, O_pad), lambda i, k: (0, 0)),  # w2: resident
            pl.BlockSpec((1, O_pad), lambda i, k: (0, 0)),      # b2: resident
        ],
        out_specs=pl.BlockSpec((TB, O_pad), lambda i, k: (i, 0)),
        scratch_shapes=[pltpu.VMEM((TB, D_pad), jnp.float32)],  # fc1 accumulator
        compiler_params=pltpu.CompilerParams(
            dimension_semantics=("parallel", "arbitrary"),
            vmem_limit_bytes=64 * 1024 * 1024,
        ),
    )(xp, w1p, b1p, w2p, b2p)

    return out[:B, :O]


def init_params(key, in_dim, out_dim=128, dtype=jnp.float32):
    """Deterministic init matching nn.Linear's U(-1/sqrt(fan_in), 1/sqrt(fan_in)).

    Weights are stored as (in_features, out_features), biases as 1-D vectors.
    """
    k1, k2, k3, k4 = jax.random.split(key, 4)
    bound = 1.0 / jnp.sqrt(in_dim)
    w1 = jax.random.uniform(k1, (in_dim, in_dim), dtype, -bound, bound)
    b1 = jax.random.uniform(k2, (in_dim,), dtype, -bound, bound)
    w2 = jax.random.uniform(k3, (in_dim, out_dim), dtype, -bound, bound)
    b2 = jax.random.uniform(k4, (out_dim,), dtype, -bound, bound)
    return w1, b1, w2, b2


if __name__ == "__main__":
    # Small but deliberately unaligned shapes to exercise the padding / tiling paths.
    B, in_dim, out_dim = 200, 96, 128

    key = jax.random.PRNGKey(0)
    kx, kp = jax.random.split(key)
    x = jax.random.normal(kx, (B, in_dim), jnp.float32)
    w1, b1, w2, b2 = init_params(kp, in_dim, out_dim)

    fwd = jax.jit(projection_head)
    out = fwd(x, w1, b1, w2, b2)
    jax.block_until_ready(out)

    # Pure-JAX reference with matching bf16 quantization points, f32 math.
    xc = x.astype(jnp.bfloat16).astype(jnp.float32)
    w1c = w1.astype(jnp.bfloat16).astype(jnp.float32)
    w2c = w2.astype(jnp.bfloat16).astype(jnp.float32)
    h = jnp.maximum(xc @ w1c + b1, 0.0).astype(jnp.bfloat16).astype(jnp.float32)
    ref = h @ w2c + b2

    assert out.shape == (B, out_dim)
    assert out.dtype == x.dtype
    err = float(jnp.max(jnp.abs(out - ref)))
    assert jnp.allclose(out, ref, atol=2e-2, rtol=2e-2), err

    print("KERNEL_OK")
</pallas_src>

<mosaic_0001>
module attributes {stable_mosaic.version = 11 : i64} {
  func.func @projection_head_kernel(%arg0: i32, %arg1: i32, %arg2: memref<200x128xbf16, #tpu.memory_space<vmem>>, %arg3: memref<128x128xbf16, #tpu.memory_space<vmem>>, %arg4: memref<1x128xf32, #tpu.memory_space<vmem>>, %arg5: memref<128x128xbf16, #tpu.memory_space<vmem>>, %arg6: memref<1x128xf32, #tpu.memory_space<vmem>>, %arg7: memref<200x128xf32, #tpu.memory_space<vmem>>, %arg8: memref<200x128xf32, #tpu.memory_space<vmem>>) attributes {dimension_semantics = [#tpu.dimension_semantics<parallel>, #tpu.dimension_semantics<arbitrary>], iteration_bounds = array<i64: 1, 1>, scalar_prefetch = 0 : i64, scratch_operands = 1 : i64, tpu.core_type = #tpu.core_type<tc>, window_params = [{transform_indices = @transform_0, window_bounds = array<i64: 200, 128>}, {transform_indices = @transform_1, window_bounds = array<i64: 128, 128>}, {pipeline_mode = #tpu.pipeline_mode<synchronous>, transform_indices = @transform_2, window_bounds = array<i64: 1, 128>}, {pipeline_mode = #tpu.pipeline_mode<synchronous>, transform_indices = @transform_3, window_bounds = array<i64: 128, 128>}, {pipeline_mode = #tpu.pipeline_mode<synchronous>, transform_indices = @transform_4, window_bounds = array<i64: 1, 128>}, {transform_indices = @transform_5, window_bounds = array<i64: 200, 128>}]} {
    %c0_i32 = arith.constant 0 : i32
    %0 = arith.cmpi eq, %arg1, %c0_i32 : i32
    %1 = arith.extui %0 : i1 to i32
    %c0_i32_0 = arith.constant 0 : i32
    %2 = arith.cmpi ne, %1, %c0_i32_0 : i32
    scf.if %2 {
      %cst_10 = arith.constant 0.000000e+00 : f32
      %12 = vector.broadcast %cst_10 : f32 to vector<200x128xf32>
      %c0_11 = arith.constant 0 : index
      %c0_12 = arith.constant 0 : index
      %13 = vector.load %arg8[%c0_11, %c0_12] : memref<200x128xf32, #tpu.memory_space<vmem>>, vector<200x128xf32>
      tpu.vector_store %arg8[%c0_11, %c0_12], %12 {strides = array<i32>} : memref<200x128xf32, #tpu.memory_space<vmem>>, vector<200x128xf32>,
    } else {
    }
    %c0 = arith.constant 0 : index
    %c0_1 = arith.constant 0 : index
    %3 = vector.load %arg8[%c0, %c0_1] : memref<200x128xf32, #tpu.memory_space<vmem>>, vector<200x128xf32>
    %c0_2 = arith.constant 0 : index
    %c0_3 = arith.constant 0 : index
    %4 = vector.load %arg2[%c0_2, %c0_3] : memref<200x128xbf16, #tpu.memory_space<vmem>>, vector<200x128xbf16>
    %c0_4 = arith.constant 0 : index
    %c0_5 = arith.constant 0 : index
    %5 = vector.load %arg3[%c0_4, %c0_5] : memref<128x128xbf16, #tpu.memory_space<vmem>>, vector<128x128xbf16>
    %cst = arith.constant dense<0.000000e+00> : vector<200x128xf32>
    %6 = tpu.matmul %4, %5, %cst {dimension_numbers = #tpu.dot_dimension_numbers<[1], [0], [0], [1], [0, 0, 1, 1], [], []>} : vector<200x128xbf16>, vector<128x128xbf16>, vector<200x128xf32> -> vector<200x128xf32>
    %7 = arith.addf %3, %6 : vector<200x128xf32>
    %c0_6 = arith.constant 0 : index
    %c0_7 = arith.constant 0 : index
    %8 = vector.load %arg8[%c0_6, %c0_7] : memref<200x128xf32, #tpu.memory_space<vmem>>, vector<200x128xf32>
    tpu.vector_store %arg8[%c0_6, %c0_7], %7 {strides = array<i32>} : memref<200x128xf32, #tpu.memory_space<vmem>>, vector<200x128xf32>,
    %c0_i32_8 = arith.constant 0 : i32
    %9 = arith.cmpi eq, %arg1, %c0_i32_8 : i32
    %10 = arith.extui %9 : i1 to i32
    %c0_i32_9 = arith.constant 0 : i32
    %11 = arith.cmpi ne, %10, %c0_i32_9 : i32
    scf.if %11 {
      %c0_10 = arith.constant 0 : index
      %c0_11 = arith.constant 0 : index
      %12 = vector.load %arg8[%c0_10, %c0_11] : memref<200x128xf32, #tpu.memory_space<vmem>>, vector<200x128xf32>
      %c0_12 = arith.constant 0 : index
      %c0_13 = arith.constant 0 : index
      %13 = vector.load %arg4[%c0_12, %c0_13] : memref<1x128xf32, #tpu.memory_space<vmem>>, vector<1x128xf32>
      %14 = vector.broadcast %13 : vector<1x128xf32> to vector<200x128xf32>
      %15 = arith.addf %12, %14 : vector<200x128xf32>
      %cst_14 = arith.constant 0.000000e+00 : f32
      %16 = vector.broadcast %cst_14 : f32 to vector<200x128xf32>
      %17 = arith.maximumf %15, %16 : vector<200x128xf32>
      %18 = arith.truncf %17 : vector<200x128xf32> to vector<200x128xbf16>
      %c0_15 = arith.constant 0 : index
      %c0_16 = arith.constant 0 : index
      %19 = vector.load %arg5[%c0_15, %c0_16] : memref<128x128xbf16, #tpu.memory_space<vmem>>, vector<128x128xbf16>
      %cst_17 = arith.constant dense<0.000000e+00> : vector<200x128xf32>
      %20 = tpu.matmul %18, %19, %cst_17 {dimension_numbers = #tpu.dot_dimension_numbers<[1], [0], [0], [1], [0, 0, 1, 1], [], []>} : vector<200x128xbf16>, vector<128x128xbf16>, vector<200x128xf32> -> vector<200x128xf32>
      %c0_18 = arith.constant 0 : index
      %c0_19 = arith.constant 0 : index
      %21 = vector.load %arg6[%c0_18, %c0_19] : memref<1x128xf32, #tpu.memory_space<vmem>>, vector<1x128xf32>
      %22 = vector.broadcast %21 : vector<1x128xf32> to vector<200x128xf32>
      %23 = arith.addf %20, %22 : vector<200x128xf32>
      %c0_20 = arith.constant 0 : index
      %c0_21 = arith.constant 0 : index
      %24 = vector.load %arg7[%c0_20, %c0_21] : memref<200x128xf32, #tpu.memory_space<vmem>>, vector<200x128xf32>
      tpu.vector_store %arg7[%c0_20, %c0_21], %23 {strides = array<i32>} : memref<200x128xf32, #tpu.memory_space<vmem>>, vector<200x128xf32>,
    } else {
    }
    return
  }
  func.func @transform_0(%arg0: i32, %arg1: i32) -> (i32, i32) {
    %c0_i32 = arith.constant 0 : i32
    return %arg0, %arg1 : i32, i32
  }
  func.func @transform_1(%arg0: i32, %arg1: i32) -> (i32, i32) {
    %c0_i32 = arith.constant 0 : i32
    %c0_i32_0 = arith.constant 0 : i32
    return %arg1, %c0_i32 : i32, i32
  }
  func.func @transform_2(%arg0: i32, %arg1: i32) -> (i32, i32) {
    %c0_i32 = arith.constant 0 : i32
    %c0_i32_0 = arith.constant 0 : i32
    %c0_i32_1 = arith.constant 0 : i32
    return %c0_i32, %c0_i32_0 : i32, i32
  }
  func.func @transform_3(%arg0: i32, %arg1: i32) -> (i32, i32) {
    %c0_i32 = arith.constant 0 : i32
    %c0_i32_0 = arith.constant 0 : i32
    %c0_i32_1 = arith.constant 0 : i32
    return %c0_i32, %c0_i32_0 : i32, i32
  }
  func.func @transform_4(%arg0: i32, %arg1: i32) -> (i32, i32) {
    %c0_i32 = arith.constant 0 : i32
    %c0_i32_0 = arith.constant 0 : i32
    %c0_i32_1 = arith.constant 0 : i32
    return %c0_i32, %c0_i32_0 : i32, i32
  }
  func.func @transform_5(%arg0: i32, %arg1: i32) -> (i32, i32) {
    %c0_i32 = arith.constant 0 : i32
    %c0_i32_0 = arith.constant 0 : i32
    return %arg0, %c0_i32 : i32, i32
  }
}

</mosaic_0001>

<bundles_post_ra>
// kernel: projection_head.1
= control target key start
LH: loop header
LB: loop body
LE: loop exit
PB: predicated region body
PF: predicated region fallthrough
CT: control target
= control target key end

     0   :  { %v1038_v1 = vmov 0.0   ;;  %vm1039_vm0 = vmmov 0   ;;  %s1291_s0 = inlined_call_operand.vmem [shape: bf16[200,128], index: 0, kind: input, shape index: {}]   ;;  %s1292_s1 = inlined_call_operand.vmem [shape: bf16[128,128], index: 1, kind: input, shape index: {}]   ;;  %s1293_s2 = inlined_call_operand.vmem [shape: f32[1,128], index: 2, kind: input, shape index: {}]   ;;  %s1294_s3 = inlined_call_operand.vmem [shape: bf16[128,128], index: 3, kind: input, shape index: {}]   ;;  %s1295_s4 = inlined_call_operand.vmem [shape: f32[1,128], index: 4, kind: input, shape index: {}]   ;;  %s1296_s5 = inlined_call_operand.hbm [shape: f32[200,128], index: 5, kind: output, shape index: {}]  }
   0x1   :  { %v987_v0 = vld [vmem:[%s1292_s1 + $0x38] sm:$0xff]   ;;  %846 = vmatprep.subr.bf16.mxu0 %v1038_v1  ;;  %914 = vmatprep.subr.bf16.mxu1 %v1038_v1  ;;  %v988_v2 = vld [vmem:[%s1292_s1 + $0x30] sm:$0xff]   ;;  %v989_v3 = vld [vmem:[%s1292_s1 + $0x28] sm:$0xff]  }
   0x2   :  { %847 = vmatpush3.bf16.msra.mxu0 %v987_v0  ;;  %862 = vmatprep.mubr.msk.bf16.mxu0 %vm1039_vm0, %v1038_v1  ;;  %v990_v4 = vld [vmem:[%s1292_s1 + $0x20] sm:$0xff]   ;;  %v991_v5 = vld [vmem:[%s1292_s1 + $0x18] sm:$0xff]   ;;  %v992_v6 = vld [vmem:[%s1292_s1 + $0x10] sm:$0xff]  }
   0x3   :  { %848 = vmatprep.subr.bf16.mxu0 %v1038_v1  ;;  %930 = vmatprep.mubr.msk.bf16.mxu1 %vm1039_vm0, %v1038_v1  ;;  %v1008_v7 = vld [vmem:[%s1294_s3 + $0x38] sm:$0xff]   ;;  %v993_v8 = vld [vmem:[%s1292_s1 + $0x8] sm:$0xff]   ;;  %v1009_v9 = vld [vmem:[%s1294_s3 + $0x30] sm:$0xff]  }
   0x4   :  { %915 = vmatpush3.bf16.msra.mxu1 %v1008_v7  ;;  %v994_v10 = vld [vmem:[%s1292_s1] sm:$0xff]   ;;  %v1010_v11 = vld [vmem:[%s1294_s3 + $0x28] sm:$0xff]  }
   0x5   :  { %916 = vmatprep.subr.bf16.mxu1 %v1038_v1 }
   0x6   :  { %849 = vmatpush3.bf16.msra.mxu0 %v988_v2 }
   0x7   :  { %850 = vmatprep.subr.bf16.mxu0 %v1038_v1 }
   0x8   :  { %917 = vmatpush3.bf16.msra.mxu1 %v1009_v9 }
   0xa   :  { %851 = vmatpush3.bf16.msra.mxu0 %v989_v3 }
   0xb   :  { %852 = vmatprep.subr.bf16.mxu0 %v1038_v1 }
   0xe   :  { %853 = vmatpush3.bf16.msra.mxu0 %v990_v4 }
   0xf   :  { %854 = vmatprep.subr.bf16.mxu0 %v1038_v1 }
  0x12   :  { %855 = vmatpush3.bf16.msra.mxu0 %v991_v5 }
  0x13   :  { %856 = vmatprep.subr.bf16.mxu0 %v1038_v1 }
  0x16   :  { %857 = vmatpush3.bf16.msra.mxu0 %v992_v6 }
  0x17   :  { %858 = vmatprep.subr.bf16.mxu0 %v1038_v1 }
  0x1a   :  { %859 = vmatpush3.bf16.msra.mxu0 %v993_v8 }
  0x1b   :  { %860 = vmatprep.subr.bf16.mxu0 %v1038_v1 }
  0x1c   :  { %10 = vsyncpa [#allocation4], 0  ;;  %918 = vmatprep.subr.bf16.mxu1 %v1038_v1  ;;  %v995_v12 = vld [vmem:[%s1291_s0] sm:$0xff]   ;;  %v1012_v14 = vld [vmem:[%s1294_s3 + $0x18] sm:$0xff]  }
  0x1d   :  { %919 = vmatpush3.bf16.msra.mxu1 %v1010_v11  ;;  %v1011_v13 = vld [vmem:[%s1294_s3 + $0x20] sm:$0xff]   ;;  %v996_v15 = vld [vmem:[%s1291_s0 + $0x8] sm:$0xff]   ;;  %v997_v16 = vld [vmem:[%s1291_s0 + $0x10] sm:$0xff]  }
  0x1e   :  { %861 = vmatpush3.bf16.msra.mxu0 %v994_v10  ;;  %920 = vmatprep.subr.bf16.mxu1 %v1038_v1  ;;  %v998_v17 = vld [vmem:[%s1291_s0 + $0x18] sm:$0xff]   ;;  %v999_v18 = vld [vmem:[%s1291_s0 + $0x20] sm:$0xff]   ;;  %v1000_v19 = vld [vmem:[%s1291_s0 + $0x28] sm:$0xff]  }
  0x1f   :  { %v1001_v20 = vld [vmem:[%s1291_s0 + $0x30] sm:$0xff]   ;;  %v1002_v21 = vld [vmem:[%s1291_s0 + $0x38] sm:$0xff]   ;;  %v1003_v22 = vld [vmem:[%s1291_s0 + $0x40] sm:$0xff]  }
  0x20   :  { %v1013_v23 = vld [vmem:[%s1294_s3 + $0x10] sm:$0xff]   ;;  %v1014_v24 = vld [vmem:[%s1294_s3 + $0x8] sm:$0xff]   ;;  %v1015_v26 = vld [vmem:[%s1294_s3] sm:$0xff]  }
  0x21   :  { %863 = vmatmul.mubr.bf16.vlgmr.msra.gmra.mxu0 %v995_v12  ;;  %921 = vmatpush3.bf16.msra.mxu1 %v1011_v13  ;;  %v1004_v25 = vld [vmem:[%s1291_s0 + $0x48] sm:$0xff]   ;;  %v1005_v27 = vld [vmem:[%s1291_s0 + $0x50] sm:$0xff]   ;;  %v1006_v28 = vld [vmem:[%s1291_s0 + $0x58] sm:$0xff]  }
  0x22   :  { %866 = vmatprep.mubr.msk.bf16.mxu0 %vm1039_vm0, %v1038_v1  ;;  %922 = vmatprep.subr.bf16.mxu1 %v1038_v1  ;;  %v1007_v29 = vld [vmem:[%s1291_s0 + $0x60] ss:$0 sps:$4 sm:$0xff]  }
  0x23   :  { %v1207_v31 = vld [vmem:[%s1293_s2] ss:$0 sm:$0xff] }
  0x25   :  { %923 = vmatpush3.bf16.msra.mxu1 %v1012_v14 }
  0x26   :  { %924 = vmatprep.subr.bf16.mxu1 %v1038_v1 }
  0x29   :  { %867 = vmatmul.mubr.bf16.gmra.mxu0 %v996_v15  ;;  %925 = vmatpush3.bf16.msra.mxu1 %v1013_v23 }
  0x2a   :  { %870 = vmatprep.mubr.msk.bf16.mxu0 %vm1039_vm0, %v1038_v1  ;;  %926 = vmatprep.subr.bf16.mxu1 %v1038_v1 }
  0x2d   :  { %927 = vmatpush3.bf16.msra.mxu1 %v1014_v24 }
  0x2e   :  { %928 = vmatprep.subr.bf16.mxu1 %v1038_v1 }
  0x31   :  { %871 = vmatmul.mubr.bf16.gmra.mxu0 %v997_v16  ;;  %929 = vmatpush3.bf16.msra.mxu1 %v1015_v26 }
  0x32   :  { %874 = vmatprep.mubr.msk.bf16.mxu0 %vm1039_vm0, %v1038_v1 }
  0x39   :  { %875 = vmatmul.mubr.bf16.gmra.mxu0 %v998_v17 }
  0x3a   :  { %878 = vmatprep.mubr.msk.bf16.mxu0 %vm1039_vm0, %v1038_v1 }
  0x41   :  { %879 = vmatmul.mubr.bf16.gmra.mxu0 %v999_v18 }
  0x42   :  { %882 = vmatprep.mubr.msk.bf16.mxu0 %vm1039_vm0, %v1038_v1 }
  0x49   :  { %883 = vmatmul.mubr.bf16.gmra.mxu0 %v1000_v19 }
  0x4a   :  { %886 = vmatprep.mubr.msk.bf16.mxu0 %vm1039_vm0, %v1038_v1 }
  0x51   :  { %887 = vmatmul.mubr.bf16.gmra.mxu0 %v1001_v20 }
  0x52   :  { %890 = vmatprep.mubr.msk.bf16.mxu0 %vm1039_vm0, %v1038_v1 }
  0x59   :  { %891 = vmatmul.mubr.bf16.gmra.mxu0 %v1002_v21 }
  0x5a   :  { %894 = vmatprep.mubr.msk.bf16.mxu0 %vm1039_vm0, %v1038_v1 }
  0x61   :  { %895 = vmatmul.mubr.bf16.gmra.mxu0 %v1003_v22 }
  0x62   :  { %898 = vmatprep.mubr.msk.bf16.mxu0 %vm1039_vm0, %v1038_v1 }
  0x69   :  { %899 = vmatmul.mubr.bf16.gmra.mxu0 %v1004_v25 }
  0x6a   :  { %902 = vmatprep.mubr.msk.bf16.mxu0 %vm1039_vm0, %v1038_v1 }
  0x71   :  { %903 = vmatmul.mubr.bf16.gmra.mxu0 %v1005_v27 }
  0x72   :  { %906 = vmatprep.mubr.msk.bf16.mxu0 %vm1039_vm0, %v1038_v1 }
  0x79   :  { %907 = vmatmul.mubr.bf16.gmra.mxu0 %v1006_v28 }
  0x7a   :  { %910 = vmatprep.mubr.msk.bf16.mxu0 %vm1039_vm0, %v1038_v1 }
  0x81   :  { %911 = vmatmul.mubr.bf16.gmra.mxu0 %v1007_v29 }
  0xe1   :  { %v275_v30 = vpop.f32.mrf.mxu0 }
  0xe2   :  { %v462_v33 = vadd.f32 %v1207_v31, %v275_v30 }
  0xe3   :  { %v864_v32 = vpop.f32.mrf.mxu0 }
  0xe4   :  { %v487_v37 = vmax.f32 %v462_v33, 0.0 }
  0xe5   :  { %v278_v34 = vpop.f32.mrf.mxu0 }
  0xe6   :  { %v463_v35 = vadd.f32 %v1207_v31, %v278_v34 }
  0xe7   :  { %v865_v36 = vpop.f32.mrf.mxu0 }
  0xe8   :  { %v488_v38 = vmax.f32 %v463_v35, 0.0 }
  0xe9   :  { %v283_v39 = vpop.f32.mrf.mxu0 }
  0xea   :  { %v512_v40 = vpack.c.bf16 %v488_v38, %v487_v37  ;;  %v464_v42 = vadd.f32 %v1207_v31, %v283_v39 }
  0xeb   :  { %v868_v41 = vpop.f32.mrf.mxu0 }
  0xec   :  { %931 = vmatmul.mubr.bf16.vlgmr.msra.gmra.mxu1 %v512_v40  ;;  %v489_v46 = vmax.f32 %v464_v42, 0.0 }
  0xed   :  { %v286_v43 = vpop.f32.mrf.mxu0  ;;  %934 = vmatprep.mubr.msk.bf16.mxu1 %vm1039_vm0, %v1038_v1 }
  0xee   :  { %v465_v44 = vadd.f32 %v1207_v31, %v286_v43 }
  0xef   :  { %v869_v45 = vpop.f32.mrf.mxu0 }
  0xf0   :  { %v490_v47 = vmax.f32 %v465_v44, 0.0 }
  0xf1   :  { %v291_v48 = vpop.f32.mrf.mxu0 }
  0xf2   :  { %v513_v49 = vpack.c.bf16 %v490_v47, %v489_v46  ;;  %v466_v51 = vadd.f32 %v1207_v31, %v291_v48 }
  0xf3   :  { %v872_v50 = vpop.f32.mrf.mxu0 }
  0xf4   :  { %935 = vmatmul.mubr.bf16.gmra.mxu1 %v513_v49  ;;  %v491_v55 = vmax.f32 %v466_v51, 0.0 }
  0xf5   :  { %v294_v52 = vpop.f32.mrf.mxu0  ;;  %938 = vmatprep.mubr.msk.bf16.mxu1 %vm1039_vm0, %v1038_v1 }
  0xf6   :  { %v467_v53 = vadd.f32 %v1207_v31, %v294_v52 }
  0xf7   :  { %v873_v54 = vpop.f32.mrf.mxu0 }
  0xf8   :  { %v492_v56 = vmax.f32 %v467_v53, 0.0 }
  0xf9   :  { %v299_v57 = vpop.f32.mrf.mxu0 }
  0xfa   :  { %v514_v58 = vpack.c.bf16 %v492_v56, %v491_v55  ;;  %v468_v60 = vadd.f32 %v1207_v31, %v299_v57 }
  0xfb   :  { %v876_v59 = vpop.f32.mrf.mxu0 }
  0xfc   :  { %939 = vmatmul.mubr.bf16.gmra.mxu1 %v514_v58  ;;  %v493_v0 = vmax.f32 %v468_v60, 0.0 }
  0xfd   :  { %v302_v61 = vpop.f32.mrf.mxu0  ;;  %942 = vmatprep.mubr.msk.bf16.mxu1 %vm1039_vm0, %v1038_v1 }
  0xfe   :  { %v469_v62 = vadd.f32 %v1207_v31, %v302_v61 }
  0xff   :  { %v877_v63 = vpop.f32.mrf.mxu0 }
 0x100   :  { %v494_v2 = vmax.f32 %v469_v62, 0.0 }
 0x101   :  { %v307_v3 = vpop.f32.mrf.mxu0 }
 0x102   :  { %v515_v4 = vpack.c.bf16 %v494_v2, %v493_v0  ;;  %v470_v6 = vadd.f32 %v1207_v31, %v307_v3 }
 0x103   :  { %v880_v5 = vpop.f32.mrf.mxu0 }
 0x104   :  { %943 = vmatmul.mubr.bf16.gmra.mxu1 %v515_v4  ;;  %v495_v10 = vmax.f32 %v470_v6, 0.0 }
 0x105   :  { %v310_v7 = vpop.f32.mrf.mxu0  ;;  %946 = vmatprep.mubr.msk.bf16.mxu1 %vm1039_vm0, %v1038_v1 }
 0x106   :  { %v471_v8 = vadd.f32 %v1207_v31, %v310_v7 }
 0x107   :  { %v881_v9 = vpop.f32.mrf.mxu0 }
 0x108   :  { %v496_v11 = vmax.f32 %v471_v8, 0.0 }
 0x109   :  { %v315_v12 = vpop.f32.mrf.mxu0 }
 0x10a   :  { %v516_v13 = vpack.c.bf16 %v496_v11, %v495_v10  ;;  %v472_v15 = vadd.f32 %v1207_v31, %v315_v12 }
 0x10b   :  { %v884_v14 = vpop.f32.mrf.mxu0 }
 0x10c   :  { %947 = vmatmul.mubr.bf16.gmra.mxu1 %v516_v13  ;;  %v497_v19 = vmax.f32 %v472_v15, 0.0 }
 0x10d   :  { %v318_v16 = vpop.f32.mrf.mxu0  ;;  %950 = vmatprep.mubr.msk.bf16.mxu1 %vm1039_vm0, %v1038_v1 }
 0x10e   :  { %v473_v17 = vadd.f32 %v1207_v31, %v318_v16 }
 0x10f   :  { %v885_v18 = vpop.f32.mrf.mxu0 }
 0x110   :  { %v498_v20 = vmax.f32 %v473_v17, 0.0 }
 0x111   :  { %v323_v21 = vpop.f32.mrf.mxu0 }
 0x112   :  { %v517_v22 = vpack.c.bf16 %v498_v20, %v497_v19  ;;  %v474_v24 = vadd.f32 %v1207_v31, %v323_v21  ;;  %v1261_v21 = vld [vmem:[%s1295_s4] ss:$0 sm:$0xff]  ;;  %s1040_s4 = smov [#allocation3]  }
 0x113   :  { %v888_v23 = vpop.f32.mrf.mxu0  ;;  %s762_s25 = sshll.u32 %s1040_s4, 4  ;;  %s763_s25 = int_to_ptr.vmem [resolvable:$true] %s762_s25 }
 0x114   :  { %951 = vmatmul.mubr.bf16.gmra.mxu1 %v517_v22  ;;  %v499_v28 = vmax.f32 %v474_v24, 0.0  ;;  %s1016_s26 = scalar_lea.vmem %s763_s25, 3200  ;;  %p1021_p1 = scmp.lt.s32.totalorder %s763_s25, %s763_s25 }
 0x115   :  { %v326_v25 = vpop.f32.mrf.mxu0  ;;  %954 = vmatprep.mubr.msk.bf16.mxu1 %vm1039_vm0, %v1038_v1  ;;  %p1017_p0 = scmp.ne.s32.totalorder %s763_s25, %s1016_s26  ;;  %p1022_p2 = scmp.lt.s32.totalorder %s1016_s26, %s1016_s26 }
 0x116   :  { %v475_v26 = vadd.f32 %v1207_v31, %v326_v25 }
 0x117   :  { %v889_v27 = vpop.f32.mrf.mxu0  ;;  %p1023_p3 = por %p1022_p2, %p1021_p1 }
 0x118   :  { %v500_v29 = vmax.f32 %v475_v26, 0.0 }
 0x119   :  { %v331_v30 = vpop.f32.mrf.mxu0  ;;  %p1024_p4 = pnand %p1023_p3, %p1017_p0 }
 0x11a   :  { %v518_v32 = vpack.c.bf16 %v500_v29, %v499_v28  ;;  %v476_v34 = vadd.f32 %v1207_v31, %v331_v30 }
 0x11b   :  { %v892_v33 = vpop.f32.mrf.mxu0 }
 0x11c   :  { %955 = vmatmul.mubr.bf16.gmra.mxu1 %v518_v32  ;;  %v501_v38 = vmax.f32 %v476_v34, 0.0 }
 0x11d   :  { %v334_v35 = vpop.f32.mrf.mxu0  ;;  %958 = vmatprep.mubr.msk.bf16.mxu1 %vm1039_vm0, %v1038_v1 }
 0x11e   :  { %v477_v36 = vadd.f32 %v1207_v31, %v334_v35 }
 0x11f   :  { %v893_v37 = vpop.f32.mrf.mxu0 }
 0x120   :  { %v502_v39 = vmax.f32 %v477_v36, 0.0 }
 0x121   :  { %v339_v40 = vpop.f32.mrf.mxu0 }
 0x122   :  { %v519_v41 = vpack.c.bf16 %v502_v39, %v501_v38  ;;  %v478_v43 = vadd.f32 %v1207_v31, %v339_v40 }
 0x123   :  { %v896_v42 = vpop.f32.mrf.mxu0 }
 0x124   :  { %959 = vmatmul.mubr.bf16.gmra.mxu1 %v519_v41  ;;  %v503_v47 = vmax.f32 %v478_v43, 0.0 }
 0x125   :  { %v342_v44 = vpop.f32.mrf.mxu0  ;;  %962 = vmatprep.mubr.msk.bf16.mxu1 %vm1039_vm0, %v1038_v1 }
 0x126   :  { %v479_v45 = vadd.f32 %v1207_v31, %v342_v44 }
 0x127   :  { %v897_v46 = vpop.f32.mrf.mxu0 }
 0x128   :  { %v504_v48 = vmax.f32 %v479_v45, 0.0 }
 0x129   :  { %v347_v49 = vpop.f32.mrf.mxu0 }
 0x12a   :  { %v520_v50 = vpack.c.bf16 %v504_v48, %v503_v47  ;;  %v480_v52 = vadd.f32 %v1207_v31, %v347_v49 }
 0x12b   :  { %v900_v51 = vpop.f32.mrf.mxu0 }
 0x12c   :  { %963 = vmatmul.mubr.bf16.gmra.mxu1 %v520_v50  ;;  %v505_v56 = vmax.f32 %v480_v52, 0.0 }
 0x12d   :  { %v350_v53 = vpop.f32.mrf.mxu0  ;;  %966 = vmatprep.mubr.msk.bf16.mxu1 %vm1039_vm0, %v1038_v1 }
 0x12e   :  { %v481_v54 = vadd.f32 %v1207_v31, %v350_v53 }
 0x12f   :  { %v901_v55 = vpop.f32.mrf.mxu0 }
 0x130   :  { %v506_v57 = vmax.f32 %v481_v54, 0.0 }
 0x131   :  { %v355_v58 = vpop.f32.mrf.mxu0 }
 0x132   :  { %v521_v59 = vpack.c.bf16 %v506_v57, %v505_v56  ;;  %v482_v61 = vadd.f32 %v1207_v31, %v355_v58 }
 0x133   :  { %v904_v60 = vpop.f32.mrf.mxu0 }
 0x134   :  { %967 = vmatmul.mubr.bf16.gmra.mxu1 %v521_v59  ;;  %v507_v2 = vmax.f32 %v482_v61, 0.0 }
 0x135   :  { %v358_v62 = vpop.f32.mrf.mxu0  ;;  %970 = vmatprep.mubr.msk.bf16.mxu1 %vm1039_vm0, %v1038_v1 }
 0x136   :  { %v483_v63 = vadd.f32 %v1207_v31, %v358_v62 }
 0x137   :  { %v905_v0 = vpop.f32.mrf.mxu0 }
 0x138   :  { %v508_v3 = vmax.f32 %v483_v63, 0.0 }
 0x139   :  { %v363_v4 = vpop.f32.mrf.mxu0 }
 0x13a   :  { %v522_v5 = vpack.c.bf16 %v508_v3, %v507_v2  ;;  %v484_v7 = vadd.f32 %v1207_v31, %v363_v4 }
 0x13b   :  { %v908_v6 = vpop.f32.mrf.mxu0 }
 0x13c   :  { %971 = vmatmul.mubr.bf16.gmra.mxu1 %v522_v5  ;;  %v509_v11 = vmax.f32 %v484_v7, 0.0 }
 0x13d   :  { %v366_v8 = vpop.f32.mrf.mxu0  ;;  %974 = vmatprep.mubr.msk.bf16.mxu1 %vm1039_vm0, %v1038_v1 }
 0x13e   :  { %v485_v9 = vadd.f32 %v1207_v31, %v366_v8 }
 0x13f   :  { %v909_v10 = vpop.f32.mrf.mxu0 }
 0x140   :  { %v510_v12 = vmax.f32 %v485_v9, 0.0 }
 0x141   :  { %v371_v13 = vpop.f32.mrf.mxu0 }
 0x142   :  { %v523_v14 = vpack.c.bf16 %v510_v12, %v509_v11  ;;  %v486_v15 = vadd.f32 %v1207_v31, %v371_v13 }
 0x143   :  { %v912_v16 = vpop.f32.mrf.mxu0 }
 0x144   :  { %v511_v17 = vmax.f32 %v486_v15, 0.0  ;;  %975 = vmatmul.mubr.bf16.gmra.mxu1 %v523_v14 }
 0x145   :  { %v374_v18 = vpop.f32.mrf.mxu0  ;;  %978 = vmatprep.mubr.msk.bf16.mxu1 %vm1039_vm0, %v1038_v1 }
 0x146   :  { %v524_v20 = vpack.c.bf16 %v511_v17, %v511_v17 }
 0x147   :  { %v913_v19 = vpop.f32.mrf.mxu0 }
 0x14c   :  { %979 = vmatmul.mubr.bf16.gmra.mxu1 %v524_v20 }
 0x1ac   :  { %v630_v22 = vpop.f32.mrf.mxu1 }
 0x1ad   :  { %v631_v23 = vadd.f32 %v1261_v21, %v630_v22 }
 0x1ae   :  { %v932_v24 = vpop.f32.mrf.mxu1 }
 0x1af   :  { %732 = vst [vmem:[#allocation3] sm:$0xff] %v631_v23 }
 0x1b0   :  { %v633_v31 = vpop.f32.mrf.mxu1 }
 0x1b1   :  { %v634_v25 = vadd.f32 %v1261_v21, %v633_v31 }
 0x1b2   :  { %v933_v26 = vpop.f32.mrf.mxu1 }
 0x1b3   :  { %733 = vst [vmem:[#allocation3 + $0x8] sm:$0xff] %v634_v25 }
 0x1b4   :  { %v638_v27 = vpop.f32.mrf.mxu1 }
 0x1b5   :  { %v639_v1 = vadd.f32 %v1261_v21, %v638_v27 }
 0x1b6   :  { %v936_v28 = vpop.f32.mrf.mxu1 }
 0x1b7   :  { %734 = vst [vmem:[#allocation3 + $0x10] sm:$0xff] %v639_v1 }
 0x1b8   :  { %v641_v29 = vpop.f32.mrf.mxu1 }
 0x1b9   :  { %v642_v30 = vadd.f32 %v1261_v21, %v641_v29 }
 0x1ba   :  { %v937_v32 = vpop.f32.mrf.mxu1 }
 0x1bb   :  { %735 = vst [vmem:[#allocation3 + $0x18] sm:$0xff] %v642_v30 }
 0x1bc   :  { %v646_v33 = vpop.f32.mrf.mxu1 }
 0x1bd   :  { %v647_v34 = vadd.f32 %v1261_v21, %v646_v33 }
 0x1be   :  { %v940_v35 = vpop.f32.mrf.mxu1 }
 0x1bf   :  { %736 = vst [vmem:[#allocation3 + $0x20] sm:$0xff] %v647_v34 }
 0x1c0   :  { %v649_v36 = vpop.f32.mrf.mxu1 }
 0x1c1   :  { %v650_v37 = vadd.f32 %v1261_v21, %v649_v36 }
 0x1c2   :  { %v941_v38 = vpop.f32.mrf.mxu1 }
 0x1c3   :  { %737 = vst [vmem:[#allocation3 + $0x28] sm:$0xff] %v650_v37 }
 0x1c4   :  { %v654_v39 = vpop.f32.mrf.mxu1 }
 0x1c5   :  { %v655_v40 = vadd.f32 %v1261_v21, %v654_v39 }
 0x1c6   :  { %v944_v41 = vpop.f32.mrf.mxu1 }
 0x1c7   :  { %738 = vst [vmem:[#allocation3 + $0x30] sm:$0xff] %v655_v40 }
 0x1c8   :  { %v657_v42 = vpop.f32.mrf.mxu1 }
 0x1c9   :  { %v658_v43 = vadd.f32 %v1261_v21, %v657_v42 }
 0x1ca   :  { %v945_v44 = vpop.f32.mrf.mxu1 }
 0x1cb   :  { %739 = vst [vmem:[#allocation3 + $0x38] sm:$0xff] %v658_v43 }
 0x1cc   :  { %v662_v45 = vpop.f32.mrf.mxu1 }
 0x1cd   :  { %v663_v46 = vadd.f32 %v1261_v21, %v662_v45 }
 0x1ce   :  { %v948_v47 = vpop.f32.mrf.mxu1 }
 0x1cf   :  { %740 = vst [vmem:[#allocation3 + $0x40] sm:$0xff] %v663_v46 }
 0x1d0   :  { %v665_v48 = vpop.f32.mrf.mxu1 }
 0x1d1   :  { %v666_v49 = vadd.f32 %v1261_v21, %v665_v48 }
 0x1d2   :  { %v949_v50 = vpop.f32.mrf.mxu1 }
 0x1d3   :  { %741 = vst [vmem:[#allocation3 + $0x48] sm:$0xff] %v666_v49 }
 0x1d4   :  { %v670_v51 = vpop.f32.mrf.mxu1 }
 0x1d5   :  { %v671_v52 = vadd.f32 %v1261_v21, %v670_v51 }
 0x1d6   :  { %v952_v53 = vpop.f32.mrf.mxu1 }
 0x1d7   :  { %742 = vst [vmem:[#allocation3 + $0x50] sm:$0xff] %v671_v52 }
 0x1d8   :  { %v673_v54 = vpop.f32.mrf.mxu1 }
 0x1d9   :  { %v674_v55 = vadd.f32 %v1261_v21, %v673_v54 }
 0x1da   :  { %v953_v56 = vpop.f32.mrf.mxu1 }
 0x1db   :  { %743 = vst [vmem:[#allocation3 + $0x58] sm:$0xff] %v674_v55 }
 0x1dc   :  { %v678_v57 = vpop.f32.mrf.mxu1 }
 0x1dd   :  { %v679_v58 = vadd.f32 %v1261_v21, %v678_v57 }
 0x1de   :  { %v956_v59 = vpop.f32.mrf.mxu1 }
 0x1df   :  { %744 = vst [vmem:[#allocation3 + $0x60] sm:$0xff] %v679_v58 }
 0x1e0   :  { %v681_v60 = vpop.f32.mrf.mxu1 }
 0x1e1   :  { %v682_v61 = vadd.f32 %v1261_v21, %v681_v60 }
 0x1e2   :  { %v957_v62 = vpop.f32.mrf.mxu1 }
 0x1e3   :  { %745 = vst [vmem:[#allocation3 + $0x68] sm:$0xff] %v682_v61 }
 0x1e4   :  { %v686_v63 = vpop.f32.mrf.mxu1 }
 0x1e5   :  { %v687_v0 = vadd.f32 %v1261_v21, %v686_v63 }
 0x1e6   :  { %v960_v2 = vpop.f32.mrf.mxu1 }
 0x1e7   :  { %746 = vst [vmem:[#allocation3 + $0x70] sm:$0xff] %v687_v0 }
 0x1e8   :  { %v689_v3 = vpop.f32.mrf.mxu1 }
 0x1e9   :  { %v690_v4 = vadd.f32 %v1261_v21, %v689_v3 }
 0x1ea   :  { %v961_v5 = vpop.f32.mrf.mxu1 }
 0x1eb   :  { %747 = vst [vmem:[#allocation3 + $0x78] sm:$0xff] %v690_v4 }
 0x1ec   :  { %v694_v6 = vpop.f32.mrf.mxu1 }
 0x1ed   :  { %v695_v7 = vadd.f32 %v1261_v21, %v694_v6 }
 0x1ee   :  { %v964_v8 = vpop.f32.mrf.mxu1 }
 0x1ef   :  { %748 = vst [vmem:[#allocation3 + $0x80] sm:$0xff] %v695_v7 }
 0x1f0   :  { %v697_v9 = vpop.f32.mrf.mxu1 }
 0x1f1   :  { %v698_v10 = vadd.f32 %v1261_v21, %v697_v9 }
 0x1f2   :  { %v965_v11 = vpop.f32.mrf.mxu1 }
 0x1f3   :  { %749 = vst [vmem:[#allocation3 + $0x88] sm:$0xff] %v698_v10 }
 0x1f4   :  { %v702_v12 = vpop.f32.mrf.mxu1 }
 0x1f5   :  { %v703_v13 = vadd.f32 %v1261_v21, %v702_v12 }
 0x1f6   :  { %v968_v14 = vpop.f32.mrf.mxu1 }
 0x1f7   :  { %750 = vst [vmem:[#allocation3 + $0x90] sm:$0xff] %v703_v13 }
 0x1f8   :  { %v705_v15 = vpop.f32.mrf.mxu1 }
 0x1f9   :  { %v706_v16 = vadd.f32 %v1261_v21, %v705_v15 }
 0x1fa   :  { %v969_v17 = vpop.f32.mrf.mxu1 }
 0x1fb   :  { %751 = vst [vmem:[#allocation3 + $0x98] sm:$0xff] %v706_v16 }
 0x1fc   :  { %v710_v18 = vpop.f32.mrf.mxu1 }
 0x1fd   :  { %v711_v19 = vadd.f32 %v1261_v21, %v710_v18 }
 0x1fe   :  { %v972_v20 = vpop.f32.mrf.mxu1 }
 0x1ff   :  { %752 = vst [vmem:[#allocation3 + $0xa0] sm:$0xff] %v711_v19 }
 0x200   :  { %v713_v22 = vpop.f32.mrf.mxu1 }
 0x201   :  { %v714_v23 = vadd.f32 %v1261_v21, %v713_v22 }
 0x202   :  { %v973_v24 = vpop.f32.mrf.mxu1 }
 0x203   :  { %753 = vst [vmem:[#allocation3 + $0xa8] sm:$0xff] %v714_v23 }
 0x204   :  { %v718_v31 = vpop.f32.mrf.mxu1 }
 0x205   :  { %v719_v25 = vadd.f32 %v1261_v21, %v718_v31 }
 0x206   :  { %v976_v26 = vpop.f32.mrf.mxu1 }
 0x207   :  { %754 = vst [vmem:[#allocation3 + $0xb0] sm:$0xff] %v719_v25 }
 0x208   :  { %v721_v27 = vpop.f32.mrf.mxu1 }
 0x209   :  { %v722_v1 = vadd.f32 %v1261_v21, %v721_v27 }
 0x20a   :  { %v977_v28 = vpop.f32.mrf.mxu1 }
 0x20b   :  { %755 = vst [vmem:[#allocation3 + $0xb8] sm:$0xff] %v722_v1 }
 0x20c   :  { %v726_v29 = vpop.f32.mrf.mxu1 }
 0x20d   :  { %v727_v30 = vadd.f32 %v1261_v21, %v726_v29 }
 0x20e   :  { %v980_v32 = vpop.f32.mrf.mxu1 }
 0x20f   :  { %756 = vst [vmem:[#allocation3 + $0xc0] sm:$0xff] %v727_v30 }
 0x210   :  { %v729_v33 = vpop.f32.mrf.mxu1 }
 0x211   :  { %1027 = shalt.err (!%p1024_p4)
}
 0x212   :  { %s1041_s27 = smov 128   ;;  %s1042_s28 = smov 8   ;;  %v981_v34 = vpop.f32.mrf.mxu1 }
 0x213   :  { %768 = dma.vmem_to_hbm [thread:$0]  %s763_s25, 3200, %s1296_s5, [#allocation4], %s1041_s27, %s1041_s27, %s1042_s28  }
 0x214   :  { %1036 = dma.done.wait [#allocation4], 3200  }
 0x215   :  { %1037 = vsyncadd [#allocation4], 4294964096 }
 0x216   :  { %772 = vsyncpa [#allocation4], 1 }

</bundles_post_ra>
